<compile_context>
chip_gen: v7x
topology: tpu7x:2x2x1
jax: 0.10.0
libtpu: 0.0.40
codegen_flags: <defaults>
</compile_context>

<pallas_src>
import jax
import jax.numpy as jnp
from jax.experimental import pallas as pl
from jax.experimental.pallas import tpu as pltpu


def _conv_matmul_kernel(w_ref, a_ref, b_ref, o_ref):
    # w_ref: (C_out, K)      bf16  - reshaped conv weights (resident across grid)
    # a_ref: (1, K, TM)      bf16  - im2col tile for image n (lanes = output pixels)
    # b_ref: (C_out, 1)      f32   - bias (resident)
    # o_ref: (1, C_out, TM)  f32   - lane-dense output tile
    acc = jnp.dot(w_ref[...], a_ref[0], preferred_element_type=jnp.float32)
    o_ref[0] = acc + b_ref[...]


def _vmem_capacity_bytes():
    """Per-TensorCore VMEM capacity (generation-aware), with a safe fallback."""
    try:
        info = pltpu.get_tpu_info()
        for attr in ("vmem_capacity_bytes", "vmem_size_bytes", "vmem_bytes"):
            v = getattr(info, attr, None)
            if v:
                return int(v)
    except Exception:
        pass
    return 64 * 1024 * 1024  # conservative default = v7x per-TC VMEM


def _pick_tm(M, K, C_out, n_images, vmem_bytes):
    """Lane-tile width, chosen by bytes (not a fixed clamp).

    Keeps 2x(A tile bf16 + out tile f32) + resident W/bias within ~45% of the
    per-core VMEM capacity, prefers a divisor of M (no padding pass anywhere),
    and caps the tile so the grid has >= 2 steps when there is only one image
    (so both TensorCores are used on 2-TC parts such as v7x).
    """
    per_col = 2 * (K * 2 + C_out * 4)          # double-buffered A(bf16) + out(f32) per lane column
    resident = C_out * K * 2 + C_out * 4       # weights + bias, single-buffered
    budget = max(int(vmem_bytes * 0.45) - resident, 128 * per_col)
    cap = budget // per_col
    if n_images == 1 and M >= 256:
        cap = min(cap, M // 2)                 # keep >= 2 grid steps on 2-TC chips
    if M <= cap:
        return M                               # one full-width lane-dense tile, no padding
    t = (cap // 128) * 128
    while t >= 128:
        if M % t == 0:
            return t                           # divides M: no padding anywhere
        t -= 128
    return (cap // 128) * 128                  # rare ragged case: wrapper pads A / slices out


def downsample_layer(x_nchw, weight, bias, *, tm=None):
    """Conv2d(in_ch, out_ch, kernel_size=3, stride=2, padding=1).

    x_nchw : (N, C_in, H, W)      float32
    weight : (C_out, C_in, 3, 3)  float32 (PyTorch OIHW layout)
    bias   : (C_out,)             float32
    returns: (N, C_out, Ho, Wo)   float32
    """
    N, C_in, H, W = x_nchw.shape
    C_out = weight.shape[0]
    Ho = (H - 1) // 2 + 1
    Wo = (W - 1) // 2 + 1
    K = C_in * 9
    M = Ho * Wo

    # --- im2col in ONE fused pass, directly in the (N, K, M) kernel layout ------
    # a[n, ic*9 + kh*3 + kw, oh*Wo + ow] = x_pad[n, ic, 2*oh + kh, 2*ow + kw]
    # The bf16 cast, the spatial pad and the 9 strided taps all fuse into the
    # stack producing A; the trailing reshape is a free (contiguous) merge.
    xb = x_nchw.astype(jnp.bfloat16)
    xp = jnp.pad(xb, ((0, 0), (0, 0), (1, 1), (1, 1)))
    taps = []
    for kh in range(3):
        for kw in range(3):
            taps.append(xp[:, :, kh:kh + 2 * Ho - 1:2, kw:kw + 2 * Wo - 1:2])
    a = jnp.stack(taps, axis=2).reshape(N, K, M)          # (N, C_in, 9, Ho, Wo) -> (N, K, M)
    # TODO(synk): build the 9 taps inside the kernel from polyphase row bands of x
    # (in-kernel lane shift + mask) to remove this last input-sized HBM pass too.

    # weight (C_out, C_in, 3, 3) -> (C_out, K); K index = ic*9 + kh*3 + kw (matches A)
    w2d = weight.reshape(C_out, K).astype(jnp.bfloat16)
    b2d = bias.reshape(C_out, 1).astype(jnp.float32)

    vmem_cap = _vmem_capacity_bytes()
    if tm is None:
        tm = _pick_tm(M, K, C_out, N, vmem_cap)
    tm = min(tm, M)

    num_m = pl.cdiv(M, tm)
    m_pad = num_m * tm
    if m_pad != M:
        a = jnp.pad(a, ((0, 0), (0, 0), (0, m_pad - M)))   # rare fallback only

    cost = pl.CostEstimate(
        flops=2 * N * m_pad * K * C_out,
        transcendentals=0,
        bytes_accessed=(N * K * m_pad * 2 + C_out * K * 2 + C_out * 4
                        + N * C_out * m_pad * 4),
    )

    out_flat = pl.pallas_call(
        _conv_matmul_kernel,
        out_shape=jax.ShapeDtypeStruct((N, C_out, m_pad), jnp.float32),
        grid_spec=pltpu.PrefetchScalarGridSpec(
            num_scalar_prefetch=0,
            grid=(N, num_m),
            in_specs=[
                pl.BlockSpec((C_out, K), lambda n, j: (0, 0)),      # weights, resident
                pl.BlockSpec((1, K, tm), lambda n, j: (n, 0, j)),   # A tile, pipelined
                pl.BlockSpec((C_out, 1), lambda n, j: (0, 0)),      # bias, resident
            ],
            out_specs=pl.BlockSpec((1, C_out, tm), lambda n, j: (n, 0, j)),
        ),
        compiler_params=pltpu.CompilerParams(
            dimension_semantics=("parallel", "parallel"),   # shard (n, m-tiles) across TCs
            vmem_limit_bytes=int(vmem_cap * 0.75),
        ),
        cost_estimate=cost,
    )(w2d, a, b2d)

    if m_pad != M:
        out_flat = out_flat[:, :, :M]
    # (N, C_out, Ho*Wo) -> (N, C_out, Ho, Wo): contiguous reshape, no transpose.
    return out_flat.reshape(N, C_out, Ho, Wo)


if __name__ == "__main__":
    key = jax.random.PRNGKey(0)
    kx, kw, kb = jax.random.split(key, 3)

    N, C_in, H, W = 2, 4, 16, 16
    C_out = 8

    x = jax.random.normal(kx, (N, C_in, H, W), dtype=jnp.float32)
    fan_in = C_in * 3 * 3
    bound = 1.0 / (fan_in ** 0.5)
    weight = jax.random.uniform(kw, (C_out, C_in, 3, 3), jnp.float32,
                                minval=-bound, maxval=bound)
    bias = jax.random.uniform(kb, (C_out,), jnp.float32,
                              minval=-bound, maxval=bound)

    out = downsample_layer(x, weight, bias)
    out = jax.block_until_ready(out)

    # reference: XLA conv with the same bf16 operands + f32 accumulation
    ref = jax.lax.conv_general_dilated(
        x.astype(jnp.bfloat16), weight.astype(jnp.bfloat16),
        window_strides=(2, 2), padding=((1, 1), (1, 1)),
        dimension_numbers=("NCHW", "OIHW", "NCHW"),
        preferred_element_type=jnp.float32)
    ref = ref + bias.reshape(1, C_out, 1, 1)

    assert out.shape == (N, C_out, H // 2, W // 2)
    assert jnp.allclose(out, ref, atol=2e-3, rtol=2e-3)

    print("KERNEL_OK")
</pallas_src>

<mosaic_0001>
module attributes {stable_mosaic.version = 11 : i64} {
  func.func @_conv_matmul_kernel(%arg0: i32, %arg1: i32, %arg2: memref<8x36xbf16, #tpu.memory_space<vmem>>, %arg3: memref<1x36x64xbf16, #tpu.memory_space<vmem>>, %arg4: memref<8x1xf32, #tpu.memory_space<vmem>>, %arg5: memref<1x8x64xf32, #tpu.memory_space<vmem>>) attributes {dimension_semantics = [#tpu.dimension_semantics<parallel>, #tpu.dimension_semantics<parallel>], iteration_bounds = array<i64: 2, 1>, scalar_prefetch = 0 : i64, scratch_operands = 0 : i64, tpu.core_type = #tpu.core_type<tc>, window_params = [{pipeline_mode = #tpu.pipeline_mode<synchronous>, transform_indices = @transform_0, window_bounds = array<i64: 8, 36>}, {transform_indices = @transform_1, window_bounds = array<i64: 1, 36, 64>}, {pipeline_mode = #tpu.pipeline_mode<synchronous>, transform_indices = @transform_2, window_bounds = array<i64: 8, 1>}, {transform_indices = @transform_3, window_bounds = array<i64: 1, 8, 64>}]} {
    %c0 = arith.constant 0 : index
    %c0_0 = arith.constant 0 : index
    %0 = vector.load %arg2[%c0, %c0_0] : memref<8x36xbf16, #tpu.memory_space<vmem>>, vector<8x36xbf16>
    %c0_1 = arith.constant 0 : index
    %c0_2 = arith.constant 0 : index
    %c0_3 = arith.constant 0 : index
    %1 = vector.load %arg3[%c0_1, %c0_2, %c0_3] : memref<1x36x64xbf16, #tpu.memory_space<vmem>>, vector<1x36x64xbf16>
    %2 = vector.shape_cast %1 : vector<1x36x64xbf16> to vector<36x64xbf16>
    %cst = arith.constant dense<0.000000e+00> : vector<8x64xf32>
    %3 = tpu.matmul %0, %2, %cst {dimension_numbers = #tpu.dot_dimension_numbers<[1], [0], [0], [1], [0, 0, 1, 1], [], []>} : vector<8x36xbf16>, vector<36x64xbf16>, vector<8x64xf32> -> vector<8x64xf32>
    %c0_4 = arith.constant 0 : index
    %c0_5 = arith.constant 0 : index
    %4 = vector.load %arg4[%c0_4, %c0_5] : memref<8x1xf32, #tpu.memory_space<vmem>>, vector<8x1xf32>
    %5 = vector.broadcast %4 : vector<8x1xf32> to vector<8x64xf32>
    %6 = arith.addf %3, %5 : vector<8x64xf32>
    %c0_6 = arith.constant 0 : index
    %c0_7 = arith.constant 0 : index
    %c0_8 = arith.constant 0 : index
    %7 = vector.load %arg5[%c0_6, %c0_7, %c0_8] : memref<1x8x64xf32, #tpu.memory_space<vmem>>, vector<1x8x64xf32>
    %8 = vector.shape_cast %7 : vector<1x8x64xf32> to vector<8x64xf32>
    %9 = vector.shape_cast %6 : vector<8x64xf32> to vector<1x8x64xf32>
    tpu.vector_store %arg5[%c0_6, %c0_7, %c0_8], %9 {strides = array<i32>} : memref<1x8x64xf32, #tpu.memory_space<vmem>>, vector<1x8x64xf32>,
    return
  }
  func.func @transform_0(%arg0: i32, %arg1: i32) -> (i32, i32) {
    %c0_i32 = arith.constant 0 : i32
    %c0_i32_0 = arith.constant 0 : i32
    %c0_i32_1 = arith.constant 0 : i32
    return %c0_i32, %c0_i32_0 : i32, i32
  }
  func.func @transform_1(%arg0: i32, %arg1: i32) -> (i32, i32, i32) {
    %c0_i32 = arith.constant 0 : i32
    %c0_i32_0 = arith.constant 0 : i32
    return %arg0, %c0_i32, %arg1 : i32, i32, i32
  }
  func.func @transform_2(%arg0: i32, %arg1: i32) -> (i32, i32) {
    %c0_i32 = arith.constant 0 : i32
    %c0_i32_0 = arith.constant 0 : i32
    %c0_i32_1 = arith.constant 0 : i32
    return %c0_i32, %c0_i32_0 : i32, i32
  }
  func.func @transform_3(%arg0: i32, %arg1: i32) -> (i32, i32, i32) {
    %c0_i32 = arith.constant 0 : i32
    %c0_i32_0 = arith.constant 0 : i32
    return %arg0, %c0_i32, %arg1 : i32, i32, i32
  }
}

</mosaic_0001>

<bundles_post_ra>
// kernel: tpu_custom_call.1
= control target key start
LH: loop header
LB: loop body
LE: loop exit
PB: predicated region body
PF: predicated region fallthrough
CT: control target
= control target key end

     0   :  { %8 = vsyncpa [#allocation3], 0  ;;  %s675_s0 = inlined_call_operand.vmem [shape: bf16[8,36], index: 0, kind: input, shape index: {}]   ;;  %s676_s1 = inlined_call_operand.vmem [shape: bf16[2,36,64], index: 1, kind: input, shape index: {}]   ;;  %s677_s2 = inlined_call_operand.vmem [shape: f32[8,1], index: 2, kind: input, shape index: {}]   ;;  %s678_s3 = inlined_call_operand.hbm [shape: f32[2,8,64], index: 3, kind: output, shape index: {}]  }
   0x1   :  { %10 = vsyncpa [#allocation3 + $0x1], 0  ;;  %s557_s12 = smov 0   ;;  %s559_s13 = smov 0  }
   0x2   :  { %s561_s14 = smov 0   ;;  %s563_s15 = smov 0  }
   0x3   :  { %s565_s16 = smov 0   ;;  %s567_s17 = smov 0  }
   0x4 LB: > { %s361_s18 = sadd.s32 4294967295, %s531_s17   ;;  %s362_s19 = sadd.s32 4294967294, %s531_s17   ;;  %s531_s17 = sphi %s567_s17, %s16_s17   ;;  %s527_s16 = sphi %s565_s16, %s685_s16   ;;  %s523_s15 = sphi %s563_s15, %s684_s15   ;;  %s519_s14 = sphi %s561_s14, %s683_s14   ;;  %s515_s13 = sphi %s559_s13, %s682_s13   ;;  %s511_s12 = sphi %s557_s12, %s681_s12  }
   0x5   : > { %s28_s20 = sadd.s32 1, %s527_s16  ;;  %s107_s21 = sadd.s32 1, %s519_s14 }
   0x6   : > { %p30_p0 = scmp.ge.s32.totalorder %s28_s20, 2  ;;  %p117_p1 = scmp.ne.s32.totalorder %s519_s14, %s515_s13 }
   0x7   : > { %p118_p2 = scmp.eq.s32.totalorder %s361_s18, 1  ;;  %p123_p3 = scmp.ne.s32.totalorder %s515_s13, %s511_s12 }
   0x8   : > { %s687_s20 = smov (%p30_p0, %s28_s20), 0  ;;  %p124_p5 = scmp.eq.s32.totalorder %s362_s19, 1 }
   0x9   : > { %p597_p4 = por %p118_p2, %p117_p1  ;;  %s102_s23 = ssub.s32 %s527_s16, %s687_s20 }
   0xa   : > { %p365_p6 = scmp.ge.s32.totalorder %s531_s17, 1  ;;  %p105_p7 = scmp.eq.s32.totalorder %s102_s23, 0 }
   0xb   : > { %p604_p8 = por %p124_p5, %p123_p3  ;;  %p159_p9 = scmp.lt.s32.totalorder %s531_s17, 3 }
   0xc   : > { %s610_s25 = scalar_select %p105_p7, %s519_s14, %s107_s21  }
   0xd   : > { %p160_p10 = pnand %p365_p6, %p159_p9 }
   0xe   : > { %p186_p11 = scmp.lt.s32.totalorder (!%p160_p10), %s523_s15, 1  ;;  %v533_v0 = vmov (!%p160_p10), 0.0   ;;  %vm534_vm0 = vmmov (!%p160_p10), 0   ;;  %v201_v1 = vld [vmem:[%s677_s2] sm:$0xff] (!%p160_p10)  ;;  %v535_v2 = vmov (!%p160_p10), 0   ;;  %vm226_vm1 = vcmask (!%p160_p10), 1041408  }
   0xf   : > { %163 = sbr.rel (%p160_p10) target bundleno = 267 (0x10b), region = 32  ;;  %380 = vmatprep.subr.bf16.mxu0 (!%p160_p10), %v533_v0  ;;  %386 = vmatprep.mubr.msk.bf16.mxu0 (!%p160_p10), %vm534_vm0, %v533_v0  ;;  %v195_v7 = vld [vmem:[%s675_s0] sm:$0xf] (!%p160_p10)  ;;  %vm222_vm2 = vcmask (!%p160_p10), 293888   ;;  %s183_s8 = sand.u32 (!%p160_p10), 1, %s515_s13   ;;  %vm270_vm3 = vcmask (!%p160_p10), 523264  }
  0x10   : > { %449 = vset.pattern.permute.xlu0 (!%p160_p10), %v535_v2  ;;  %s366_s9 = sshll.u32 (!%p160_p10), %s183_s8, 3  ;;  %s373_s10 = sshll.u32 (!%p160_p10), %s523_s15, 7 }
  0x11   : > { %204 = vperm.xlu0 (!%p160_p10), %449, %v201_v1   ;;  %s185_s11 = scalar_lea.vmem (!%p160_p10), [#allocation2], %s366_s9  ;;  %s628_s23 = scalar_lea.hbm (!%p160_p10), %s678_s3, %s373_s10 }
  0x12   : > { %s287_s18 = sshll.u32 (!%p160_p10), %s185_s11, 4  ;;  %s536_s27 = smov (!%p160_p10), [#allocation2]   ;;  %s630_s18 = int_to_ptr.vmem [resolvable:$true] %s287_s18 }
  0x13   : > { %s453_s26 = scalar_lea.vmem (!%p160_p10), %s630_s18, 128 }
  0x14   : > { %p454_p12 = scmp.ne.s32.totalorder (!%p160_p10), %s630_s18, %s453_s26 }
  0x16   : > { %s187_s28 = scalar_select %p186_p11, %s523_s15, 1 }
  0x17   : > { %s273_s15 = scalar_lea.sflag [#allocation3], %s183_s8  ;;  %p455_p13 = pnand %p454_p12, %p597_p4 }
  0x18   : > { %s390_s29 = smul.u32 20, %s187_s28  ;;  %s457_s28 = sshll.u32 %s536_s27, 4  ;;  %s458_s28 = int_to_ptr.vmem [resolvable:$false] %s457_s28 }
  0x19   : > { %p456_p0 = pneg %p455_p13  ;;  %p460_p1 = scmp.lt.s32.totalorder %s630_s18, %s458_s28 }
  0x1a   : > { %s193_s5 = scalar_lea.vmem %s676_s1, %s390_s29  ;;  %s459_s29 = scalar_lea.vmem %s458_s28, 256 }
  0x1b   : > { %v450_v3 = vld [vmem:[%s193_s5] sm:$0xff]   ;;  %v451_v4 = vld [vmem:[%s193_s5 + $0x8] sm:$0xff]   ;;  %v452_v5 = vld [vmem:[%s193_s5 + $0x10] ss:$0 sps:$4 sm:$0x33]   ;;  %p461_p2 = scmp.lt.s32.totalorder %s459_s29, %s453_s26 }
  0x1c   : > { %381 = vmatpush3.bf16.msra.mxu0 %v450_v3  ;;  %v228_v6 = vsel %vm226_vm1, %v452_v5, 0 }
  0x1d   : > { %382 = vmatprep.subr.bf16.mxu0 %v533_v0  ;;  %p462_p3 = por %p461_p2, %p460_p1 }
  0x1f   : > { %p463_p5 = pnand %p462_p3, %p456_p0 }
  0x20   : > { %383 = vmatpush3.bf16.msra.mxu0 %v451_v4 }
  0x21   : > { %384 = vmatprep.subr.bf16.mxu0 %v533_v0 }
  0x24   : > { %385 = vmatpush3.bf16.msra.mxu0 %v228_v6 }
  0x27   : > { %387 = vmatmul.mubr.msk.bf16.vlgmr.msra.gmra.mrb[0].mxu0 %vm222_vm2, %v195_v7 }
  0x90   : > { %v205_v8 = vpop.permute.xlu0 %204 }
  0xfa   : > { %v264_v9 = vpop.f32.mrb[0].mxu0 }
  0xfb   : > { %v265_v10 = vadd.f32 %v264_v9, %v205_v8  ;;  %v388_v11 = vpop.f32.mrb[1].mxu0 }
  0xfc   : > { %v267_v12 = vpop.f32.mrb[2].mxu0 }
  0xfd   : > { %v389_v13 = vpop.f32.mrb[3].mxu0  ;;  %271 = vst.msk [vmem:[%s185_s11] sm:$0xff] %vm270_vm3, %v265_v10 }
  0xfe   : > { %466 = shalt.err (!%p463_p5)
}
  0xff   : > { %s467_s30 = scalar_lea.hbm %s628_s23, 128  ;;  %s471_s6 = scalar_lea.hbm %s678_s3, 256 }
 0x100   : > { %p468_p6 = scmp.ne.s32.totalorder %s628_s23, %s467_s30  ;;  %p472_p10 = scmp.lt.u32.totalorder %s628_s23, %s678_s3 }
 0x101   : > { %p473_p11 = scmp.lt.u32.totalorder %s471_s6, %s467_s30  ;;  %p475_p13 = scmp.lt.u32.totalorder %s467_s30, %s628_s23 }
 0x102   : > { %p469_p7 = pnand %p468_p6, %p597_p4 }
 0x103   : > { %p474_p12 = por %p473_p11, %p472_p10 }
 0x104   : > { %p470_p9 = pneg %p469_p7 }
 0x105   : > { %p476_p0 = por %p475_p13, %p474_p12 }
 0x107   : > { %p477_p1 = pnand %p476_p0, %p470_p9 }
 0x109   : > { %480 = shalt.err (!%p477_p1)
}
 0x10a   : > { %391 = dma.vmem_to_hbm [thread:$0]  (%p597_p4), %s630_s18, 128, %s628_s23, %s273_s15  }
 0x10b PF: > { %p397_p2 = scmp.ge.s32.totalorder %s531_s17, 2  ;;  %s299_s9 = sand.u32 1, %s511_s12  }
 0x10c   : > { %s300_s10 = scalar_lea.sflag [#allocation3], %s299_s9 }
 0x10d   : > { %p394_p3 = pnand %p397_p2, %p604_p8 }
 0x10f   : > { %506 = dma.done.wait (!%p394_p3), %s300_s10, 128  }
 0x110   : > { %508 = vsyncadd (!%p394_p3), %s300_s10, 4294967168  ;;  %s16_s17 = sadd.s32 1, %s531_s17   ;;  %s681_s12 = smov %s515_s13 }
 0x111   : > { %p13_p5 = scmp.ge.s32.totalorder %s16_s17, 4   ;;  %s682_s13 = smov %s519_s14 }
 0x112   : > { %s683_s14 = smov %s610_s25  ;;  %s684_s15 = smov %s527_s16 }
 0x113   : > { %s685_s16 = smov %s687_s20  ;;  %15 = sbr.rel (!%p13_p5) target bundleno = 4 (0x4), region = 67 }
 0x11a   :  { %305 = vsyncpa [#allocation3], 1 }
 0x11b   :  { %307 = vsyncpa [#allocation3 + $0x1], 1 }

</bundles_post_ra>
